<compile_context>
chip_gen: v7x
topology: tpu7x:2x2x1
jax: 0.10.0
libtpu: 0.0.40
codegen_flags: <defaults>
</compile_context>

<pallas_src>
import math

import jax
import jax.numpy as jnp
from jax.experimental import pallas as pl
from jax.experimental.pallas import tpu as pltpu


def make_positional_encoding(embedding_dim: int, max_len: int = 8000) -> jnp.ndarray:
    """Deterministic buffer setup, mirroring the PyTorch __init__ exactly."""
    position = jnp.arange(0, max_len, dtype=jnp.float32)[:, None]            # (max_len, 1)
    div_term = jnp.exp(
        jnp.arange(0, embedding_dim, 2, dtype=jnp.float32)
        * (-math.log(10000.0) / embedding_dim)
    )                                                                         # (D/2,)
    pe = jnp.zeros((max_len, embedding_dim), dtype=jnp.float32)
    pe = pe.at[:, 0::2].set(jnp.sin(position * div_term))
    pe = pe.at[:, 1::2].set(jnp.cos(position * div_term))
    return pe[None, :, :]                                                     # (1, max_len, D)


def _pos_enc_kernel(x_ref, pe_ref, o_ref):
    # Memory-bound elementwise op; f32 compute is free under the HBM roofline
    # and keeps the v5e (no bf16 VALU) path safe.
    x = x_ref[...].astype(jnp.float32)
    pe = pe_ref[...].astype(jnp.float32)
    o_ref[...] = (x + jnp.float32(0.95) * pe).astype(o_ref.dtype)


# If the whole problem fits in <= 1 MiB, collapse to a single grid point
# (per-step overhead dominates); otherwise keep >= B grid steps so both v7x
# TensorCores get work.
_COLLAPSE_BYTES = 1 * 1024 * 1024


def _tpu_block_budget():
    """(bytes per x-sized block, explicit vmem_limit_bytes or None).

    With pe cast to x.dtype the three streams (x, pe, out) are equal-sized, so
    double-buffered VMEM use is ~6x the block budget:
      v5e:  2 MiB -> 12 MiB  (scoped default 16 MiB)
      v6e:  2 MiB -> 12 MiB  (scoped default 32 MiB)
      v7x:  4 MiB -> 24 MiB  (raise limit to 48 MiB of 64 MiB physical)
    """
    kind = ""
    try:
        kind = jax.devices()[0].device_kind.lower()
    except Exception:
        pass
    if "v7" in kind:
        return 4 * 1024 * 1024, 48 << 20
    return 2 * 1024 * 1024, None


def _lane_dense_layout(S: int, D: int):
    """Return (R, C) with S*D == R*C, C lane-friendly, R sublane-friendly.

    Keep (S, D) if D is already a multiple of 128; otherwise flatten to a
    (R, 128k) slab, preferring splits where R is a multiple of 8 so neither
    the sublane nor the lane dimension pads in VMEM/vregs."""
    if D % 128 == 0:
        return S, D
    flat = S * D
    candidates = [c for c in (4096, 2048, 1024, 512, 256, 128) if flat % c == 0]
    for c in candidates:                       # largest lane-dense C with dense rows
        if (flat // c) % 8 == 0:
            return flat // c, c
    if candidates:                             # lane-dense but sublane-padded
        c = candidates[0]
        return flat // c, c
    # Fallback: original layout (full-extent last-dim block is legal; stores
    # are masked but correct).
    return S, D


def positional_encoding_forward(x: jnp.ndarray, pe: jnp.ndarray) -> jnp.ndarray:
    """x: (B, S, D); pe: (1, max_len, D) float32. Returns (B, S, D) in x.dtype."""
    B, S, D = x.shape
    assert pe.shape[2] == D, "embedding_dim mismatch between x and pe"
    assert S <= pe.shape[1], "sequence length exceeds positional-encoding max_len"

    # Same dynamic slicing as the PyTorch forward; cast pe to x.dtype so its
    # HBM stream + VMEM block match x's (halves both for bf16/f16 inputs).
    pe_slice = pe[:, :S, :].astype(x.dtype)    # (1, S, D)

    # Lane-dense presentation of the (S, D) plane. pe broadcasts over batch
    # only, so flattening (S, D) jointly preserves the elementwise pairing.
    R, C = _lane_dense_layout(S, D)
    x_r = x.reshape(B, R, C)
    pe_r = pe_slice.reshape(1, R, C)

    itemsize = jnp.dtype(x.dtype).itemsize
    block_budget, vmem_limit = _tpu_block_budget()

    # Row tile: budget-sized, multiple of 8; cdiv tiling handles any R
    # (Pallas pads the partial edge block, harmless for an elementwise op).
    budget_rows = max(8, (block_budget // (C * itemsize)) // 8 * 8)
    TR = R if R <= budget_rows else budget_rows

    total_bytes = B * R * C * itemsize
    TB = B if total_bytes <= _COLLAPSE_BYTES else 1

    # (row_tile, batch): batch innermost => each pe tile fetched once per row
    # tile and stays resident across the batch loop.
    grid = (pl.cdiv(R, TR), B // TB)

    cp_kwargs = dict(dimension_semantics=("parallel", "parallel"))
    if vmem_limit is not None:
        cp_kwargs["vmem_limit_bytes"] = vmem_limit

    out_r = pl.pallas_call(
        _pos_enc_kernel,
        out_shape=jax.ShapeDtypeStruct((B, R, C), x.dtype),
        grid_spec=pltpu.PrefetchScalarGridSpec(
            num_scalar_prefetch=0,
            grid=grid,
            in_specs=[
                pl.BlockSpec((TB, TR, C), lambda s, b: (b, s, 0)),  # x tile
                pl.BlockSpec((1, TR, C), lambda s, b: (0, s, 0)),   # pe tile: constant over b
            ],
            out_specs=pl.BlockSpec((TB, TR, C), lambda s, b: (b, s, 0)),
        ),
        compiler_params=pltpu.CompilerParams(**cp_kwargs),
    )(x_r, pe_r)

    return out_r.reshape(B, S, D)


if __name__ == "__main__":
    # Small shapes consistent with the module's forward: (batch, seq, embedding_dim)
    B, S, D = 2, 8, 384           # embedding_dim = 384 as in the PyTorch spec
    MAX_LEN = 64

    key = jax.random.PRNGKey(0)
    x = jax.random.normal(key, (B, S, D), dtype=jnp.float32)
    pe = make_positional_encoding(D, MAX_LEN)

    out = positional_encoding_forward(x, pe)
    out = jax.block_until_ready(out)

    # Reference check against plain JAX (same math as the PyTorch forward).
    ref = x + 0.95 * pe[:, :S, :]
    assert out.shape == (B, S, D)
    assert out.dtype == x.dtype
    assert jnp.allclose(out, ref, atol=1e-6), "mismatch vs reference"

    print("KERNEL_OK")
</pallas_src>

<mosaic_0001>
module attributes {stable_mosaic.version = 11 : i64} {
  func.func @_pos_enc_kernel(%arg0: i32, %arg1: i32, %arg2: memref<2x8x384xf32, #tpu.memory_space<vmem>>, %arg3: memref<1x8x384xf32, #tpu.memory_space<vmem>>, %arg4: memref<2x8x384xf32, #tpu.memory_space<vmem>>) attributes {dimension_semantics = [#tpu.dimension_semantics<parallel>, #tpu.dimension_semantics<parallel>], iteration_bounds = array<i64: 1, 1>, scalar_prefetch = 0 : i64, scratch_operands = 0 : i64, tpu.core_type = #tpu.core_type<tc>, window_params = [{transform_indices = @transform_0, window_bounds = array<i64: 2, 8, 384>}, {transform_indices = @transform_1, window_bounds = array<i64: 1, 8, 384>}, {transform_indices = @transform_2, window_bounds = array<i64: 2, 8, 384>}]} {
    %c0 = arith.constant 0 : index
    %c0_0 = arith.constant 0 : index
    %c0_1 = arith.constant 0 : index
    %0 = vector.load %arg2[%c0, %c0_0, %c0_1] : memref<2x8x384xf32, #tpu.memory_space<vmem>>, vector<2x8x384xf32>
    %c0_2 = arith.constant 0 : index
    %c0_3 = arith.constant 0 : index
    %c0_4 = arith.constant 0 : index
    %1 = vector.load %arg3[%c0_2, %c0_3, %c0_4] : memref<1x8x384xf32, #tpu.memory_space<vmem>>, vector<1x8x384xf32>
    %cst = arith.constant 0.949999988 : f32
    %2 = vector.broadcast %cst : f32 to vector<1x8x384xf32>
    %3 = arith.mulf %2, %1 : vector<1x8x384xf32>
    %4 = vector.broadcast %3 : vector<1x8x384xf32> to vector<2x8x384xf32>
    %5 = arith.addf %0, %4 : vector<2x8x384xf32>
    %c0_5 = arith.constant 0 : index
    %c0_6 = arith.constant 0 : index
    %c0_7 = arith.constant 0 : index
    %6 = vector.load %arg4[%c0_5, %c0_6, %c0_7] : memref<2x8x384xf32, #tpu.memory_space<vmem>>, vector<2x8x384xf32>
    tpu.vector_store %arg4[%c0_5, %c0_6, %c0_7], %5 {strides = array<i32>} : memref<2x8x384xf32, #tpu.memory_space<vmem>>, vector<2x8x384xf32>,
    return
  }
  func.func @transform_0(%arg0: i32, %arg1: i32) -> (i32, i32, i32) {
    %c0_i32 = arith.constant 0 : i32
    %c0_i32_0 = arith.constant 0 : i32
    return %arg1, %arg0, %c0_i32 : i32, i32, i32
  }
  func.func @transform_1(%arg0: i32, %arg1: i32) -> (i32, i32, i32) {
    %c0_i32 = arith.constant 0 : i32
    %c0_i32_0 = arith.constant 0 : i32
    %c0_i32_1 = arith.constant 0 : i32
    return %c0_i32, %arg0, %c0_i32_0 : i32, i32, i32
  }
  func.func @transform_2(%arg0: i32, %arg1: i32) -> (i32, i32, i32) {
    %c0_i32 = arith.constant 0 : i32
    %c0_i32_0 = arith.constant 0 : i32
    return %arg1, %arg0, %c0_i32 : i32, i32, i32
  }
}

</mosaic_0001>

<bundles_post_ra>
// kernel: tpu_custom_call.1
= control target key start
LH: loop header
LB: loop body
LE: loop exit
PB: predicated region body
PF: predicated region fallthrough
CT: control target
= control target key end

     0   :  { %7 = vsyncpa [#allocation3], 0  ;;  %s219_s0 = inlined_call_operand.hbm [shape: f32[2,8,384], index: 0, kind: input, shape index: {}]   ;;  %s220_s1 = inlined_call_operand.hbm [shape: f32[1,8,384], index: 1, kind: input, shape index: {}]   ;;  %s221_s2 = inlined_call_operand.hbm [shape: f32[2,8,384], index: 2, kind: output, shape index: {}]  }
   0x1   :  { %8 = vsyncpa [#allocation6], 0 }
   0x2   :  { %9 = vsyncpa [#allocation4], 0  ;;  %s157_s9 = smov [#allocation2]   ;;  %s85_s13 = scalar_lea.hbm %s219_s0, 768 }
   0x3   :  { %s15_s10 = sshll.u32 %s157_s9, 4  ;;  %p86_p0 = scmp.ne.s32.totalorder %s219_s0, %s85_s13  ;;  %s16_s10 = int_to_ptr.vmem [resolvable:$true] %s15_s10 }
   0x4   :  { %p89_p1 = scmp.lt.u32.totalorder %s85_s13, %s219_s0 }
   0x6   :  { %p91_p2 = pnand %p89_p1, %p86_p0 }
   0x8   :  { %94 = shalt.err (!%p91_p2)
}
   0x9   :  { %s95_s18 = scalar_lea.vmem %s16_s10, 768  ;;  %p100_p4 = scmp.lt.s32.totalorder %s16_s10, %s16_s10 }
   0xa   :  { %p96_p3 = scmp.ne.s32.totalorder %s16_s10, %s95_s18  ;;  %p101_p5 = scmp.lt.s32.totalorder %s95_s18, %s95_s18 }
   0xc   :  { %p102_p6 = por %p101_p5, %p100_p4 }
   0xe   :  { %p103_p7 = pnand %p102_p6, %p96_p3 }
  0x10   :  { %106 = shalt.err (!%p103_p7)
}
  0x11   :  { %s158_s19 = smov 384   ;;  %s159_s20 = smov 24  }
  0x12   :  { %21 = dma.hbm_to_vmem [thread:$0]  %s219_s0, 768, %s16_s10, [#allocation3], %s158_s19, %s158_s19, %s159_s20  }
  0x13   :  { %s160_s23 = smov [#allocation5]   ;;  %s107_s27 = scalar_lea.hbm %s220_s1, 384 }
  0x14   :  { %s28_s24 = sshll.u32 %s160_s23, 4  ;;  %p108_p8 = scmp.ne.s32.totalorder %s220_s1, %s107_s27  ;;  %s29_s24 = int_to_ptr.vmem [resolvable:$true] %s28_s24 }
  0x15   :  { %p111_p9 = scmp.lt.u32.totalorder %s107_s27, %s220_s1 }
  0x17   :  { %p113_p10 = pnand %p111_p9, %p108_p8 }
  0x19   :  { %116 = shalt.err (!%p113_p10)
}
  0x1a   :  { %s117_s4 = scalar_lea.vmem %s29_s24, 384  ;;  %p122_p12 = scmp.lt.s32.totalorder %s29_s24, %s29_s24 }
  0x1b   :  { %p118_p11 = scmp.ne.s32.totalorder %s29_s24, %s117_s4  ;;  %p123_p13 = scmp.lt.s32.totalorder %s117_s4, %s117_s4 }
  0x1d   :  { %p124_p0 = por %p123_p13, %p122_p12 }
  0x1f   :  { %p125_p1 = pnand %p124_p0, %p118_p11 }
  0x21   :  { %128 = shalt.err (!%p125_p1)
}
  0x22   :  { %31 = dma.hbm_to_vmem [thread:$0]  %s220_s1, 384, %s29_s24, [#allocation6]  }
  0x23   :  { %151 = dma.done.wait [#allocation3], 768  }
  0x24   :  { %152 = vsyncadd [#allocation3], 4294966528 }
  0x25   :  { %153 = dma.done.wait [#allocation6], 384  }
  0x26   :  { %154 = vsyncadd [#allocation6], 4294966912  ;;  %v38_v0 = vld [vmem:[#allocation2] sm:$0xff]  ;;  %v44_v1 = vld [vmem:[#allocation5] sm:$0xff]  ;;  %s161_s6 = smov [#allocation7]  }
  0x27   :  { %v39_v2 = vld [vmem:[#allocation2 + $0x8] sm:$0xff]  ;;  %v47_v3 = vmul.f32 0.95, %v44_v1  ;;  %v45_v4 = vld [vmem:[#allocation5 + $0x8] sm:$0xff]  ;;  %v40_v5 = vld [vmem:[#allocation2 + $0x10] sm:$0xff]  ;;  %s67_s7 = sshll.u32 %s161_s6, 4  ;;  %s68_s7 = int_to_ptr.vmem [resolvable:$true] %s67_s7 }
  0x28   :  { %v46_v6 = vld [vmem:[#allocation5 + $0x10] sm:$0xff]  ;;  %v48_v7 = vmul.f32 0.95, %v45_v4  ;;  %v41_v9 = vld [vmem:[#allocation2 + $0x18] sm:$0xff]  ;;  %v43_v13 = vld [vmem:[#allocation2 + $0x28] sm:$0xff]  ;;  %s129_s1 = scalar_lea.vmem %s68_s7, 768  ;;  %p134_p3 = scmp.lt.s32.totalorder %s68_s7, %s68_s7 }
  0x29   :  { %v49_v8 = vmul.f32 0.95, %v46_v6  ;;  %v42_v10 = vld [vmem:[#allocation2 + $0x20] sm:$0xff]  ;;  %v50_v11 = vadd.f32 %v47_v3, %v38_v0  ;;  %v53_v12 = vadd.f32 %v47_v3, %v41_v9  ;;  %p130_p2 = scmp.ne.s32.totalorder %s68_s7, %s129_s1  ;;  %p135_p4 = scmp.lt.s32.totalorder %s129_s1, %s129_s1 }
  0x2a   :  { %v51_v14 = vadd.f32 %v48_v7, %v39_v2  ;;  %v54_v16 = vadd.f32 %v48_v7, %v42_v10 }
  0x2b   :  { %v52_v15 = vadd.f32 %v49_v8, %v40_v5  ;;  %v55_v17 = vadd.f32 %v49_v8, %v43_v13  ;;  %56 = vst [vmem:[#allocation7] sm:$0xff] %v50_v11  ;;  %59 = vst [vmem:[#allocation7 + $0x18] sm:$0xff] %v53_v12  ;;  %p136_p5 = por %p135_p4, %p134_p3 }
  0x2c   :  { %57 = vst [vmem:[#allocation7 + $0x8] sm:$0xff] %v51_v14  ;;  %60 = vst [vmem:[#allocation7 + $0x20] sm:$0xff] %v54_v16 }
  0x2d   :  { %58 = vst [vmem:[#allocation7 + $0x10] sm:$0xff] %v52_v15  ;;  %61 = vst [vmem:[#allocation7 + $0x28] sm:$0xff] %v55_v17  ;;  %p137_p6 = pnand %p136_p5, %p130_p2 }
  0x2f   :  { %140 = shalt.err (!%p137_p6)
}
  0x30   :  { %s141_s10 = scalar_lea.hbm %s221_s2, 768 }
  0x31   :  { %p142_p7 = scmp.ne.s32.totalorder %s221_s2, %s141_s10  ;;  %p145_p8 = scmp.lt.u32.totalorder %s141_s10, %s221_s2 }
  0x33   :  { %p147_p9 = pnand %p145_p8, %p142_p7 }
  0x35   :  { %150 = shalt.err (!%p147_p9)
}
  0x36   :  { %73 = dma.vmem_to_hbm [thread:$0]  %s68_s7, 768, %s221_s2, [#allocation4], %s158_s19, %s158_s19, %s159_s20  }
  0x37   :  { %155 = dma.done.wait [#allocation4], 768  }
  0x38   :  { %156 = vsyncadd [#allocation4], 4294966528 }
  0x39   :  { %77 = vsyncpa [#allocation3], 1 }
  0x3a   :  { %78 = vsyncpa [#allocation6], 1 }
  0x3b   :  { %79 = vsyncpa [#allocation4], 1 }

</bundles_post_ra>
